<compile_context>
chip_gen: v7x
topology: tpu7x:2x2x1
jax: 0.10.0
libtpu: 0.0.40
codegen_flags: <defaults>
</compile_context>

<pallas_src>
import functools

import numpy as np
import jax
import jax.numpy as jnp
from jax.experimental import pallas as pl
from jax.experimental.pallas import tpu as pltpu


def compute_success_probs(n_def, s):
    return [s ** i for i in range(n_def + 1)]


def build_coefficient_matrix(probs):
    """probs: (4, D) rows = [P11, P12, P21, P22]  ->  S: (2, 10*D) f32.

    With static rewards (R1 == R2 == j, r0 = j[:,0], r1 = j[:,1]) every payoff
    slab is coeff[d] * r0[b] (even slabs) or coeff[d] * r1[b] (odd slabs), so
    the full payoff tensor is  p_flat = r0 * S[0] + r1 * S[1].
    """
    probs = np.asarray(probs, dtype=np.float32)
    P11, P12, P21, P22 = probs[0], probs[1], probs[2], probs[3]
    z = np.zeros_like(P11)
    # slab order: E11, E12, P11*E21, P11*E22, (1-P11)*E21, (1-P11)*E22,
    #             P12*E21, P12*E22, (1-P12)*E21, (1-P12)*E22
    s0 = np.concatenate([P11, z, P11 * P21, z, (1.0 - P11) * P21, z,
                         P12 * P21, z, (1.0 - P12) * P21, z])
    s1 = np.concatenate([z, P12, z, P11 * P22, z, (1.0 - P11) * P22,
                         z, P12 * P22, z, (1.0 - P12) * P22])
    return jnp.asarray(np.stack([s0, s1], axis=0))        # (2, 10*D)


def security_game_kernel(x_ref, w_ref, s_ref, pflat_ref, j_ref, *, max_val):
    # x_ref     : (TB, F)       feature tile (batch on sublanes, feats on lanes)
    # w_ref     : (2, F)        fc weight, Linear(nFeats, 2, bias=False)
    # s_ref     : (2, 10*D)     precomputed payoff coefficient matrix
    # pflat_ref : (TB, 10*D)    payoff tile (lane-dense slab; reshaped outside)
    # j_ref     : (TB, 2)       learned (negative) rewards
    x = x_ref[...]                                         # (TB, F)
    w = w_ref[...]                                         # (2, F)
    s = s_ref[...]                                         # (2, 10*D)

    # fc projection on the VPU/XLU: y[:, c] = sum_f x[:, f] * w[c, f].
    # F and the output width (2) are tiny, so the MXU would waste a full pass.
    y0 = jnp.sum(x * w[0:1, :], axis=-1, keepdims=True)    # (TB, 1)
    y1 = jnp.sum(x * w[1:2, :], axis=-1, keepdims=True)    # (TB, 1)

    r0 = -(jnp.tanh(y0) + 1.0) * max_val                   # j[:, 0:1]
    r1 = -(jnp.tanh(y1) + 1.0) * max_val                   # j[:, 1:2]

    # Single store for j (lane width 2 is dictated by the module interface).
    j_ref[...] = jnp.concatenate([r0, r1], axis=-1)

    # Payoff tensor as a 2-term broadcast multiply-add against the coefficient
    # matrix: one lane-dense store of the whole (TB, 10*D) slab.
    pflat_ref[...] = r0 * s[0:1, :] + r1 * s[1:2, :]


def security_game_paynet_forward(x, w, s_coef, max_val, *, block_b=512):
    """x: (B, nFeats) f32, w: (2, nFeats) f32, s_coef: (2, 10*(nDef+1)) f32."""
    x = jnp.asarray(x, jnp.float32)
    w = jnp.asarray(w, jnp.float32)
    s_coef = jnp.asarray(s_coef, jnp.float32)

    B, F = x.shape
    ten_d = s_coef.shape[1]
    D = ten_d // 10

    # Batch tile: multiple of 8 (f32 sublanes). Per-row footprint is ~(F+10D+2)
    # f32 (~350 B for D=8), double-buffered -> even TB=512 stays far below the
    # scoped-VMEM limit on v7x (64 MiB physical / 32 MiB default scoped).
    block_b = max(8, (block_b // 8) * 8)
    if B <= block_b:
        tb = B                       # block == full dim is always layout-legal
        b_pad = B
    else:
        tb = block_b
        b_pad = pl.cdiv(B, tb) * tb  # pad so every grid block is full
    x_p = x if b_pad == B else jnp.pad(x, ((0, b_pad - B), (0, 0)))
    grid = (b_pad // tb,)

    p_flat, j = pl.pallas_call(
        functools.partial(security_game_kernel, max_val=float(max_val)),
        grid=grid,
        out_shape=(
            jax.ShapeDtypeStruct((b_pad, ten_d), jnp.float32),
            jax.ShapeDtypeStruct((b_pad, 2), jnp.float32),
        ),
        in_specs=[
            pl.BlockSpec((tb, F), lambda i: (i, 0)),       # streamed per tile
            pl.BlockSpec((2, F), lambda i: (0, 0)),        # resident constant
            pl.BlockSpec((2, ten_d), lambda i: (0, 0)),    # resident constant
        ],
        out_specs=(
            pl.BlockSpec((tb, ten_d), lambda i: (i, 0)),
            pl.BlockSpec((tb, 2), lambda i: (i, 0)),
        ),
        compiler_params=pltpu.CompilerParams(
            dimension_semantics=("parallel",),             # 2x on v7x megacore
        ),
    )(x_p, w, s_coef)

    if b_pad != B:
        p_flat = p_flat[:B]
        j = j[:B]
    P = p_flat.reshape(B, 10, D)

    # TODO(synk): ZSGSeqSolver (the (u, v) game solution) has no provided
    # implementation in the reference code, so it is not translated here.
    u, v = None, None
    return u, v, P, j


def reference_forward(x, w, probs, max_val):
    """Pure-JAX reference of the same math, for verification."""
    j = -(jnp.tanh(x @ w.T) + 1.0) * max_val               # (B, 2)
    P11, P12, P21, P22 = probs[0], probs[1], probs[2], probs[3]
    r0 = j[:, 0:1]
    r1 = j[:, 1:2]
    E11 = P11[None, :] * r0
    E12 = P12[None, :] * r1
    E21 = P21[None, :] * r0
    E22 = P22[None, :] * r1
    P = jnp.stack(
        [
            E11,
            E12,
            P11 * E21,
            P11 * E22,
            (1.0 - P11) * E21,
            (1.0 - P11) * E22,
            P12 * E21,
            P12 * E22,
            (1.0 - P12) * E21,
            (1.0 - P12) * E22,
        ],
        axis=1,
    )
    return P, j


if __name__ == "__main__":
    # Small config consistent with the module: nDef defenders, nFeats features.
    nDef = 7           # -> D = nDef + 1 = 8
    nFeats = 4
    max_val = 1.0
    S1 = (0.4, 0.6)    # S2 defaults to S1
    D = nDef + 1

    key = jax.random.PRNGKey(0)
    kx, kw, kx2 = jax.random.split(key, 3)
    # fc = nn.Linear(nFeats, 2, bias=False) -> weight shape (2, nFeats)
    w = 0.3 * jax.random.normal(kw, (2, nFeats), dtype=jnp.float32)

    # Success-probability vectors (SecurityGameTransform constants).
    P11 = np.array(compute_success_probs(nDef, S1[0]), dtype=np.float32)
    P12 = np.array(list(reversed(compute_success_probs(nDef, S1[1]))), dtype=np.float32)
    P21 = np.array(compute_success_probs(nDef, S1[0]), dtype=np.float32)   # S2 == S1
    P22 = np.array(list(reversed(compute_success_probs(nDef, S1[1]))), dtype=np.float32)
    probs = np.stack([P11, P12, P21, P22], axis=0)                         # (4, D)
    probs_j = jnp.asarray(probs)

    # Batch-independent coefficient matrix, built once outside the kernel.
    S_coef = build_coefficient_matrix(probs)                               # (2, 10*D)

    # Case 1: small batch, single grid step (block == full batch).
    batch = 4
    x = jax.random.normal(kx, (batch, nFeats), dtype=jnp.float32)
    u, v, P, j = security_game_paynet_forward(x, w, S_coef, max_val)
    P = jax.block_until_ready(P)
    j = jax.block_until_ready(j)
    P_ref, j_ref = reference_forward(x, w, probs_j, max_val)
    assert P.shape == (batch, 10, D)
    assert j.shape == (batch, 2)
    np.testing.assert_allclose(np.asarray(P), np.asarray(P_ref), rtol=1e-5, atol=1e-6)
    np.testing.assert_allclose(np.asarray(j), np.asarray(j_ref), rtol=1e-5, atol=1e-6)

    # Case 2: larger batch to exercise the batch-tiled grid + padding path.
    batch2 = 40
    x2 = jax.random.normal(kx2, (batch2, nFeats), dtype=jnp.float32)
    _, _, P2, j2 = security_game_paynet_forward(x2, w, S_coef, max_val, block_b=16)
    P2 = jax.block_until_ready(P2)
    j2 = jax.block_until_ready(j2)
    P2_ref, j2_ref = reference_forward(x2, w, probs_j, max_val)
    assert P2.shape == (batch2, 10, D)
    assert j2.shape == (batch2, 2)
    np.testing.assert_allclose(np.asarray(P2), np.asarray(P2_ref), rtol=1e-5, atol=1e-6)
    np.testing.assert_allclose(np.asarray(j2), np.asarray(j2_ref), rtol=1e-5, atol=1e-6)

    print("KERNEL_OK")
</pallas_src>

<mosaic_0001>
module attributes {stable_mosaic.version = 11 : i64} {
  func.func @security_game_kernel(%arg0: i32, %arg1: memref<4x4xf32, #tpu.memory_space<vmem>>, %arg2: memref<2x4xf32, #tpu.memory_space<vmem>>, %arg3: memref<2x80xf32, #tpu.memory_space<vmem>>, %arg4: memref<4x80xf32, #tpu.memory_space<vmem>>, %arg5: memref<4x2xf32, #tpu.memory_space<vmem>>) attributes {dimension_semantics = [#tpu.dimension_semantics<parallel>], iteration_bounds = array<i64: 1>, scalar_prefetch = 0 : i64, scratch_operands = 0 : i64, tpu.core_type = #tpu.core_type<tc>, window_params = [{transform_indices = @transform_0, window_bounds = array<i64: 4, 4>}, {pipeline_mode = #tpu.pipeline_mode<synchronous>, transform_indices = @transform_1, window_bounds = array<i64: 2, 4>}, {pipeline_mode = #tpu.pipeline_mode<synchronous>, transform_indices = @transform_2, window_bounds = array<i64: 2, 80>}, {transform_indices = @transform_3, window_bounds = array<i64: 4, 80>}, {transform_indices = @transform_4, window_bounds = array<i64: 4, 2>}]} {
    %c0 = arith.constant 0 : index
    %c0_0 = arith.constant 0 : index
    %0 = vector.load %arg1[%c0, %c0_0] : memref<4x4xf32, #tpu.memory_space<vmem>>, vector<4x4xf32>
    %c0_1 = arith.constant 0 : index
    %c0_2 = arith.constant 0 : index
    %1 = vector.load %arg2[%c0_1, %c0_2] : memref<2x4xf32, #tpu.memory_space<vmem>>, vector<2x4xf32>
    %c0_3 = arith.constant 0 : index
    %c0_4 = arith.constant 0 : index
    %2 = vector.load %arg3[%c0_3, %c0_4] : memref<2x80xf32, #tpu.memory_space<vmem>>, vector<2x80xf32>
    %3 = vector.extract_strided_slice %1 {offsets = [0, 0], sizes = [1, 4], strides = [1, 1]} : vector<2x4xf32> to vector<1x4xf32>
    %4 = vector.broadcast %3 : vector<1x4xf32> to vector<4x4xf32>
    %5 = arith.mulf %0, %4 : vector<4x4xf32>
    %cst = arith.constant dense<0.000000e+00> : vector<4xf32>
    %6 = vector.multi_reduction <add>, %5, %cst [1] : vector<4x4xf32> to vector<4xf32>
    %7 = vector.shape_cast %6 : vector<4xf32> to vector<4x1xf32>
    %8 = vector.extract_strided_slice %1 {offsets = [1, 0], sizes = [1, 4], strides = [1, 1]} : vector<2x4xf32> to vector<1x4xf32>
    %9 = vector.broadcast %8 : vector<1x4xf32> to vector<4x4xf32>
    %10 = arith.mulf %0, %9 : vector<4x4xf32>
    %cst_5 = arith.constant dense<0.000000e+00> : vector<4xf32>
    %11 = vector.multi_reduction <add>, %10, %cst_5 [1] : vector<4x4xf32> to vector<4xf32>
    %12 = vector.shape_cast %11 : vector<4xf32> to vector<4x1xf32>
    %13 = math.tanh %7 : vector<4x1xf32>
    %cst_6 = arith.constant 1.000000e+00 : f32
    %14 = vector.broadcast %cst_6 : f32 to vector<4x1xf32>
    %15 = arith.addf %13, %14 : vector<4x1xf32>
    %cst_7 = arith.constant 0.000000e+00 : f32
    %16 = vector.broadcast %cst_7 : f32 to vector<4x1xf32>
    %17 = arith.subf %16, %15 : vector<4x1xf32>
    %cst_8 = arith.constant 1.000000e+00 : f32
    %18 = vector.broadcast %cst_8 : f32 to vector<4x1xf32>
    %19 = arith.mulf %17, %18 : vector<4x1xf32>
    %20 = math.tanh %12 : vector<4x1xf32>
    %cst_9 = arith.constant 1.000000e+00 : f32
    %21 = vector.broadcast %cst_9 : f32 to vector<4x1xf32>
    %22 = arith.addf %20, %21 : vector<4x1xf32>
    %cst_10 = arith.constant 0.000000e+00 : f32
    %23 = vector.broadcast %cst_10 : f32 to vector<4x1xf32>
    %24 = arith.subf %23, %22 : vector<4x1xf32>
    %cst_11 = arith.constant 1.000000e+00 : f32
    %25 = vector.broadcast %cst_11 : f32 to vector<4x1xf32>
    %26 = arith.mulf %24, %25 : vector<4x1xf32>
    %27 = tpu.concatenate %19, %26 in 1 : vector<4x1xf32>, vector<4x1xf32> -> vector<4x2xf32>
    %c0_12 = arith.constant 0 : index
    %c0_13 = arith.constant 0 : index
    %28 = vector.load %arg5[%c0_12, %c0_13] : memref<4x2xf32, #tpu.memory_space<vmem>>, vector<4x2xf32>
    tpu.vector_store %arg5[%c0_12, %c0_13], %27 {strides = array<i32>} : memref<4x2xf32, #tpu.memory_space<vmem>>, vector<4x2xf32>,
    %29 = vector.extract_strided_slice %2 {offsets = [0, 0], sizes = [1, 80], strides = [1, 1]} : vector<2x80xf32> to vector<1x80xf32>
    %30 = vector.broadcast %19 : vector<4x1xf32> to vector<4x80xf32>
    %31 = vector.broadcast %29 : vector<1x80xf32> to vector<4x80xf32>
    %32 = arith.mulf %30, %31 : vector<4x80xf32>
    %33 = vector.extract_strided_slice %2 {offsets = [1, 0], sizes = [1, 80], strides = [1, 1]} : vector<2x80xf32> to vector<1x80xf32>
    %34 = vector.broadcast %26 : vector<4x1xf32> to vector<4x80xf32>
    %35 = vector.broadcast %33 : vector<1x80xf32> to vector<4x80xf32>
    %36 = arith.mulf %34, %35 : vector<4x80xf32>
    %37 = arith.addf %32, %36 : vector<4x80xf32>
    %c0_14 = arith.constant 0 : index
    %c0_15 = arith.constant 0 : index
    %38 = vector.load %arg4[%c0_14, %c0_15] : memref<4x80xf32, #tpu.memory_space<vmem>>, vector<4x80xf32>
    tpu.vector_store %arg4[%c0_14, %c0_15], %37 {strides = array<i32>} : memref<4x80xf32, #tpu.memory_space<vmem>>, vector<4x80xf32>,
    return
  }
  func.func @transform_0(%arg0: i32) -> (i32, i32) {
    %c0_i32 = arith.constant 0 : i32
    %c0_i32_0 = arith.constant 0 : i32
    return %arg0, %c0_i32 : i32, i32
  }
  func.func @transform_1(%arg0: i32) -> (i32, i32) {
    %c0_i32 = arith.constant 0 : i32
    %c0_i32_0 = arith.constant 0 : i32
    %c0_i32_1 = arith.constant 0 : i32
    return %c0_i32, %c0_i32_0 : i32, i32
  }
  func.func @transform_2(%arg0: i32) -> (i32, i32) {
    %c0_i32 = arith.constant 0 : i32
    %c0_i32_0 = arith.constant 0 : i32
    %c0_i32_1 = arith.constant 0 : i32
    return %c0_i32, %c0_i32_0 : i32, i32
  }
  func.func @transform_3(%arg0: i32) -> (i32, i32) {
    %c0_i32 = arith.constant 0 : i32
    %c0_i32_0 = arith.constant 0 : i32
    return %arg0, %c0_i32 : i32, i32
  }
  func.func @transform_4(%arg0: i32) -> (i32, i32) {
    %c0_i32 = arith.constant 0 : i32
    %c0_i32_0 = arith.constant 0 : i32
    return %arg0, %c0_i32 : i32, i32
  }
}

</mosaic_0001>

<bundles_post_ra>
// kernel: tpu_custom_call.1
= control target key start
LH: loop header
LB: loop body
LE: loop exit
PB: predicated region body
PF: predicated region fallthrough
CT: control target
= control target key end

     0   :  { %10 = vsyncpa [#allocation3], 0  ;;  %s205_s0 = inlined_call_operand.hbm [shape: f32[4,4], index: 0, kind: input, shape index: {}]   ;;  %s206_s1 = inlined_call_operand.vmem [shape: f32[2,4], index: 1, kind: input, shape index: {}]   ;;  %s207_s2 = inlined_call_operand.vmem [shape: f32[2,80], index: 2, kind: input, shape index: {}]   ;;  %s208_s3 = inlined_call_operand.hbm [shape: f32[4,80], index: 3, kind: output, shape index: {0}]   ;;  %s209_s4 = inlined_call_operand.vmem [shape: f32[4,2], index: 4, kind: output, shape index: {1}]  }
   0x1   :  { %11 = vsyncpa [#allocation4], 0  ;;  %s145_s15 = smov [#allocation2]   ;;  %s97_s19 = scalar_lea.hbm %s205_s0, 64 }
   0x2   :  { %s18_s16 = sshll.u32 %s145_s15, 4  ;;  %p98_p0 = scmp.ne.s32.totalorder %s205_s0, %s97_s19  ;;  %s19_s16 = int_to_ptr.vmem [resolvable:$true] %s18_s16 }
   0x3   :  { %p101_p1 = scmp.lt.u32.totalorder %s97_s19, %s205_s0 }
   0x5   :  { %p103_p2 = pnand %p101_p1, %p98_p0 }
   0x7   :  { %106 = shalt.err (!%p103_p2)
}
   0x8   :  { %s107_s24 = scalar_lea.vmem %s19_s16, 64  ;;  %p112_p4 = scmp.lt.s32.totalorder %s19_s16, %s19_s16 }
   0x9   :  { %p108_p3 = scmp.ne.s32.totalorder %s19_s16, %s107_s24  ;;  %p113_p5 = scmp.lt.s32.totalorder %s107_s24, %s107_s24 }
   0xb   :  { %p114_p6 = por %p113_p5, %p112_p4 }
   0xd   :  { %p115_p7 = pnand %p114_p6, %p108_p3 }
   0xf   :  { %118 = shalt.err (!%p115_p7)
}
  0x10   :  { %21 = dma.hbm_to_vmem [thread:$0]  %s205_s0, 64, %s19_s16, [#allocation3]  }
  0x11   :  { %141 = dma.done.wait [#allocation3], 64  }
  0x12   :  { %142 = vsyncadd [#allocation3], 4294967232  ;;  %v32_v0 = vlaneseq  ;;  %v29_v4 = vld [vmem:[#allocation2] sm:$0xf]  ;;  %v30_v5 = vld [vmem:[%s206_s1] sm:$0x3] }
  0x13   :  { %vm37_vm0 = vcmask 27648   ;;  %v31_v16 = vld [vmem:[%s207_s2] sm:$0x3]  ;;  %vm55_vm1 = vcmask 7168   ;;  %vm57_vm2 = vcmask 11264   ;;  %s146_s1 = smov [#allocation5]  }
  0x14   :  { %v33_v1 = vshrl.u32 %v32_v0, 7  ;;  %s78_s30 = sshll.u32 %s146_s1, 4  ;;  %vm70_vm3 = vcmask 650240   ;;  %s79_s30 = int_to_ptr.vmem [resolvable:$true] %s78_s30 }
  0x15   :  { %s119_s2 = scalar_lea.vmem %s79_s30, 64  ;;  %p124_p9 = scmp.lt.s32.totalorder %s79_s30, %s79_s30 }
  0x16   :  { %v34_v2 = vsub.s32 0, %v33_v1  ;;  %v43_v3 = vsub.s32 1, %v33_v1  ;;  %p120_p8 = scmp.ne.s32.totalorder %s79_s30, %s119_s2  ;;  %p125_p10 = scmp.lt.s32.totalorder %s119_s2, %s119_s2 }
  0x18   :  { %v35_v6 = vrot.slane %v30_v5, %v34_v2  ;;  %v44_v7 = vrot.slane %v30_v5, %v43_v3  ;;  %v62_v18 = vrot.slane %v31_v16, %v34_v2  ;;  %v67_v20 = vrot.slane %v31_v16, %v43_v3  ;;  %p126_p11 = por %p125_p10, %p124_p9 }
  0x1a   :  { %v36_v8 = vmul.f32 %v35_v6, %v29_v4  ;;  %v45_v9 = vmul.f32 %v44_v7, %v29_v4  ;;  %p127_p12 = pnand %p126_p11, %p120_p8 }
  0x1c   :  { %v38_v10 = vsel %vm37_vm0, %v36_v8, 0.0  ;;  %v46_v11 = vsel %vm37_vm0, %v45_v9, 0.0 }
  0x1d   :  { %39 = vadd.xlane.f32.xlu0 %v38_v10 }
  0x21   :  { %47 = vadd.xlane.f32.xlu0 %v46_v11 }
  0xaa   :  { %v40_v12 = vpop.xlane.xlu0 %39 }
  0xab   :  { %93 = vtanh.f32 %v40_v12 }
  0xae   :  { %v48_v13 = vpop.xlane.xlu0 %47 }
  0xaf   :  { %95 = vtanh.f32 %v48_v13 }
  0xb5   :  { %v94_v14 = vpop.eup %93 }
  0xb6   :  { %v50_v15 = vadd.f32 1.0, %v94_v14 }
  0xb8   :  { %v51_v19 = vsub.f32 0.0, %v50_v15 }
  0xb9   :  { %v96_v17 = vpop.eup %95 }
  0xba   :  { %v53_v21 = vadd.f32 1.0, %v96_v17  ;;  %v63_v23 = vmul.f32 %v62_v18, %v51_v19 }
  0xbc   :  { %v54_v22 = vsub.f32 0.0, %v53_v21 }
  0xbe   :  { %v56_v24 = vsel %vm55_vm1, %v51_v19, %v54_v22  ;;  %v68_v25 = vmul.f32 %v67_v20, %v54_v22 }
  0xbf   :  { %58 = vst.msk [vmem:[%s209_s4] sm:$0xf] %vm57_vm2, %v56_v24 }
  0xc0   :  { %v69_v26 = vadd.f32 %v68_v25, %v63_v23 }
  0xc2   :  { %71 = vst.msk [vmem:[#allocation5] sm:$0xf] %vm70_vm3, %v69_v26 }
  0xc3   :  { %130 = shalt.err (!%p127_p12)
}
  0xc4   :  { %s131_s9 = scalar_lea.hbm %s208_s3, 64 }
  0xc5   :  { %p132_p13 = scmp.ne.s32.totalorder %s208_s3, %s131_s9  ;;  %p135_p0 = scmp.lt.u32.totalorder %s131_s9, %s208_s3 }
  0xc7   :  { %p137_p1 = pnand %p135_p0, %p132_p13 }
  0xc9   :  { %140 = shalt.err (!%p137_p1)
}
  0xca   :  { %81 = dma.vmem_to_hbm [thread:$0]  %s79_s30, 64, %s208_s3, [#allocation4]  }
  0xcb   :  { %143 = dma.done.wait [#allocation4], 64  }
  0xcc   :  { %144 = vsyncadd [#allocation4], 4294967232 }
  0xcd   :  { %89 = vsyncpa [#allocation3], 1 }
  0xce   :  { %90 = vsyncpa [#allocation4], 1 }

</bundles_post_ra>
